<compile_context>
chip_gen: v5e
topology: v5e:2x2
jax: 0.10.0
libtpu: 0.0.40
codegen_flags: <defaults>
</compile_context>

<pallas_src>
import numpy as np
import jax
import jax.numpy as jnp
from jax import lax
from jax.experimental import pallas as pl
from jax.experimental.pallas import tpu as pltpu

INF = 1000000.0

# ----------------------------------------------------------------------------- #
# Constraint construction (pure python parameter setup, ported from the module)  #
# ----------------------------------------------------------------------------- #
def is_transition_allowed(constraint_type, from_tag, from_entity, to_tag, to_entity):
    if to_tag == 'START' or from_tag == 'END':
        return False
    if constraint_type == 'BIOUL':
        if from_tag == 'START':
            return to_tag in ('B', 'I', 'O', 'L', 'U')
        if to_tag == 'END':
            return from_tag in ('B', 'I', 'O', 'L', 'U')
        return any([from_tag in ('O', 'L', 'U') and to_tag in ('O', 'B', 'U'),
                    from_tag in ('B', 'I') and to_tag in ('I', 'L') and from_entity == to_entity])
    elif constraint_type == 'BIO':
        if from_tag == 'START':
            return to_tag in ('O', 'B', 'I')
        if to_tag == 'END':
            return from_tag in ('O', 'B', 'I')
        return any([to_tag in ('O', 'B'),
                    to_tag == 'I' and from_tag in ('B', 'I') and from_entity == to_entity])
    elif constraint_type == 'IOB1':
        if from_tag == 'START':
            return to_tag in ('O', 'I')
        if to_tag == 'END':
            return from_tag in ('O', 'B', 'I')
        return any([to_tag in ('O', 'I'),
                    to_tag == 'B' and from_tag in ('B', 'I') and from_entity == to_entity])
    elif constraint_type == 'BMES':
        if from_tag == 'START':
            return to_tag in ('B', 'S')
        if to_tag == 'END':
            return from_tag in ('E', 'S')
        return any([to_tag in ('B', 'S') and from_tag in ('E', 'S'),
                    to_tag == 'M' and from_tag == 'B' and from_entity == to_entity,
                    to_tag == 'E' and from_tag in ('B', 'M') and from_entity == to_entity])
    else:
        raise TypeError(f'Unknown constraint type: {constraint_type}')


def allowed_transitions(constraint_type, labels):
    num_labels = len(labels)
    allowed = np.zeros((num_labels, num_labels), dtype=np.float32)
    items = list(labels.items())
    for fi, fl in items:
        if fl in ('START', 'END'):
            ft, fe = fl, ''
        else:
            ft, fe = fl[0], fl[1:]
        for ti, tl in items:
            if tl in ('START', 'END'):
                tt, te = tl, ''
            else:
                tt, te = tl[0], tl[1:]
            if is_transition_allowed(constraint_type, ft, fe, tt, te):
                allowed[fi, ti] = 1.0
    return allowed


# ----------------------------------------------------------------------------- #
# Pallas kernel 1: _expand_potentials                                            #
# out[b, n, i, j] = tag_scores[b, n, j] + transition_params[j, i]                #
# Written lane-dense: out_flat[b, n, i*C + j]                                    #
# ----------------------------------------------------------------------------- #
def _make_expand_kernel(C):
    def kernel(em_ref, ptf_ref, out_ref):
        # em_ref : (1, tn, C)     tag scores for this (batch, seq-chunk)
        # ptf_ref: (1, C*C)       flattened transitions.T (ptf[i*C + j] = params[j, i])
        # out_ref: (1, tn, C*C)   lane-dense output block
        # (Optionally the store could be cast to bfloat16 if downstream tolerates it.)
        out_ref[...] = jnp.tile(em_ref[...], (1, 1, C)) + ptf_ref[...][:, None, :]
    return kernel


def _pick_seq_tile(n, c2):
    # Largest multiple-of-8 divisor of n whose (tn, C*C) f32 block stays ~<= 4 MiB.
    if n % 8 != 0:
        return n
    cap = max(8, min(2048, (4 * 1024 * 1024) // (c2 * 4)))
    cap = min(cap - (cap % 8), n)
    for t in range(cap, 7, -8):
        if n % t == 0:
            return t
    return n


def expand_potentials_pallas(tag_scores, transition_params):
    B, N, C = tag_scores.shape
    C2 = C * C
    ptf = jnp.transpose(transition_params).astype(jnp.float32).reshape(1, C2)
    ts = tag_scores.astype(jnp.float32)
    tn = _pick_seq_tile(N, C2)
    grid = (B, N // tn)
    out = pl.pallas_call(
        _make_expand_kernel(C),
        out_shape=jax.ShapeDtypeStruct((B, N, C2), jnp.float32),
        grid=grid,
        in_specs=[pl.BlockSpec((1, tn, C), lambda b, n: (b, n, 0)),
                  pl.BlockSpec((1, C2), lambda b, n: (0, 0))],
        out_specs=pl.BlockSpec((1, tn, C2), lambda b, n: (b, n, 0)),
        compiler_params=pltpu.CompilerParams(
            dimension_semantics=("parallel", "parallel")),
    )(ts, ptf)
    # Minor-dim split -> pure metadata reshape (no extra HBM pass).
    return out.reshape(B, N, C, C)


# ----------------------------------------------------------------------------- #
# Pallas kernel 2: constrained Viterbi decode                                    #
# Layout: tags on sublanes, batch on lanes (Bt lanes per grid program).          #
# ----------------------------------------------------------------------------- #
def _make_viterbi_kernel(N, C, Bt, start_idx):
    f32 = jnp.float32
    i32 = jnp.int32

    def kernel(blockmax_ref, len_ref, em_ref, tp_ref, end_ref, out_ref, hist_ref):
        # blockmax_ref: SMEM (G,) int32   per-program max sequence length
        # len_ref     : (1, 1, Bt) int32  per-lane sequence lengths
        # em_ref      : (1, N, C, Bt) f32 emissions (to-tag on sublanes, batch on lanes)
        # tp_ref      : (C, C, 1) f32     constraint-masked transitions [from, to]
        # end_ref     : (C, 1) f32        transitions[:, END]
        # out_ref     : (1, N, Bt) int32  decoded tags, time-major (transposed by wrapper)
        # hist_ref    : (N, C, Bt) int32  backpointer history scratch
        Lmax = blockmax_ref[pl.program_id(0)]

        # Hoisted, loop-invariant broadcasts (JAX does not CSE broadcast_in_dim).
        trans_b = jnp.broadcast_to(tp_ref[...], (C, C, Bt))      # [f, t, b] = trans[f, t]
        end_b = jnp.broadcast_to(end_ref[...], (C, Bt))          # [t, b] = trans[t, END]
        len_row = len_ref[0]                                     # (1, Bt) int32
        len_cb = jnp.broadcast_to(len_row, (C, Bt))              # per-lane lengths
        from_iota = lax.broadcasted_iota(i32, (C, Bt), 0)        # sublane ('from'-tag) index

        # t = 1: score[t, b] = trans[START, t] + em[1, t, b]
        score0 = trans_b[start_idx] + em_ref[0, 1]

        def fwd(i, score):
            em_i = em_ref[0, i]                                  # (C_to, Bt)
            # Fused running max + first-argmax over the C 'from' slices (pure VALU).
            best = (score[0:1, :] + trans_b[0]) + em_i
            best_idx = jnp.zeros((C, Bt), i32)
            for f in range(1, C):
                cand = (score[f:f + 1, :] + trans_b[f]) + em_i
                take = cand > best                               # strict > keeps first argmax
                best_idx = jnp.where(take, f, best_idx)
                best = jnp.where(take, cand, best)
            hist_ref[i] = best_idx
            return jnp.where(i < len_cb - 1, best, score)        # per-lane validity

        # Dynamic trip count: only real timesteps of this block are scanned.
        score = lax.fori_loop(2, Lmax - 1, fwd, score0)

        # Final scores and best last tag (first-argmax over tags, per lane).
        final = score + end_b                                    # (C, Bt)
        best_v = final[0:1, :]
        best_last = jnp.zeros((1, Bt), i32)
        for j in range(1, C):
            row = final[j:j + 1, :]
            take = row > best_v
            best_last = jnp.where(take, j, best_last)
            best_v = jnp.where(take, row, best_v)

        # Prefill: tags[t] = best_last for all t (covers t >= L_b - 2), tags[0] = 0.
        out_ref[0] = jnp.broadcast_to(best_last, (N, Bt))
        out_ref[0, pl.ds(0, 1), :] = jnp.zeros((1, Bt), i32)

        # Backtrace walk: t = Lmax-3 .. 1; one lane-dense (1, Bt) row store per step.
        n_bwd = jnp.maximum(Lmax - 3, 0)

        def bwd(step, cur):                                      # cur: (1, Bt) int32
            t = Lmax - 3 - step
            h = hist_ref[t + 1].astype(f32)                      # (C, Bt)
            picked = jnp.where(from_iota == cur, h, 0.0)
            gathered = jnp.sum(picked, axis=0, keepdims=True).astype(i32)   # h[cur_b, b]
            nxt = jnp.where(t < len_row - 2, gathered, best_last)           # per-lane
            out_ref[0, pl.ds(t, 1), :] = nxt
            return nxt

        lax.fori_loop(0, n_bwd, bwd, best_last)

    return kernel


def viterbi_decode_pallas(tag_scores, lengths, trans, start_idx, end_idx, batch_tile=None):
    """tag_scores: (B, N, C) float, lengths: (B,) int, trans: constraint-masked (C, C)."""
    B, N, C = tag_scores.shape
    assert N >= 2, "Viterbi decode needs sequence length >= 2 (mask[0] must be all-true)."
    if batch_tile is None:
        Bt = 1 if B < 2 else min(128, (B + 1) // 2)   # keep >= 2 grid programs (v7x megacore)
    else:
        Bt = max(1, int(batch_tile))
    G = -(-B // Bt)
    Bp = G * Bt

    ts = tag_scores.astype(jnp.float32)
    lengths = lengths.astype(jnp.int32)
    if Bp > B:
        ts = jnp.pad(ts, ((0, Bp - B), (0, 0), (0, 0)))
        lengths = jnp.concatenate([lengths, jnp.full((Bp - B,), 2, jnp.int32)])

    # (Bp, N, C) -> (G, N, C, Bt): tags on sublanes, batch-tile on lanes (one XLA transpose).
    em = jnp.transpose(ts.reshape(G, Bt, N, C), (0, 2, 3, 1))
    len_lanes = lengths.reshape(G, 1, Bt)
    blockmax = jnp.max(lengths.reshape(G, Bt), axis=1).astype(jnp.int32)     # (G,)
    trans = trans.astype(jnp.float32)
    tp3 = trans[:, :, None]                                                  # (C, C, 1)
    end3 = trans[:, end_idx][:, None]                                        # (C, 1)

    out = pl.pallas_call(
        _make_viterbi_kernel(N, C, Bt, start_idx),
        out_shape=jax.ShapeDtypeStruct((G, N, Bt), jnp.int32),
        grid_spec=pltpu.PrefetchScalarGridSpec(
            num_scalar_prefetch=1,
            grid=(G,),
            in_specs=[
                pl.BlockSpec((1, 1, Bt), lambda g, bm: (g, 0, 0)),
                pl.BlockSpec((1, N, C, Bt), lambda g, bm: (g, 0, 0, 0)),
                pl.BlockSpec((C, C, 1), lambda g, bm: (0, 0, 0)),
                pl.BlockSpec((C, 1), lambda g, bm: (0, 0)),
            ],
            out_specs=pl.BlockSpec((1, N, Bt), lambda g, bm: (g, 0, 0)),
            scratch_shapes=[pltpu.VMEM((N, C, Bt), jnp.int32)],              # backpointers
        ),
        compiler_params=pltpu.CompilerParams(
            dimension_semantics=("parallel",),
            vmem_limit_bytes=64 * 1024 * 1024,
        ),
    )(blockmax, len_lanes, em, tp3, end3)

    # (G, N, Bt) -> (B, N)  (tiny int32 transpose done by XLA outside the kernel).
    tags = jnp.transpose(out, (0, 2, 1)).reshape(Bp, N)[:B]
    return tags


# ----------------------------------------------------------------------------- #
# Forward wrapper (eval mode, labels=None path of PatialEERCRF.forward)          #
# ----------------------------------------------------------------------------- #
def patial_eer_crf_forward(tag_scores, attention_mask, params, constraints,
                           start_idx, end_idx):
    # No host sync on max_length (no data-dependent recompiles): kernels run over the
    # full static sequence length; positions past each row's length are padding and
    # are handled inside the Viterbi kernel via the prefetched lengths. Downstream
    # consumers (LinearChainCRF) use `lengths` to ignore padded log_phis positions.
    B, N, C = tag_scores.shape
    lengths = jnp.sum(attention_mask.astype(jnp.int32), axis=-1)
    ts = tag_scores.astype(jnp.float32)
    params = params.astype(jnp.float32)
    constraints = constraints.astype(jnp.float32)

    # log_phis = self._expand_potentials(tag_scores)  (input to LinearChainCRF)
    log_phis = expand_potentials_pallas(ts, params)

    # self.decode(tag_scores, attention_mask)
    trans = params + (1.0 - constraints) * (-INF)     # constraint-masked transitions (tiny)
    iob2 = viterbi_decode_pallas(ts, lengths, trans, start_idx, end_idx)

    outputs = {'iob2': iob2, 'log_phis': log_phis}
    losses = {}
    # TODO(synk): loss path (LinearChainCRF partition / marginals, torch_struct) not implemented.
    return outputs, losses


# ----------------------------------------------------------------------------- #
# Numpy reference (mirrors the PyTorch code) for a sanity check                  #
# ----------------------------------------------------------------------------- #
def reference_forward(tag_scores, attention_mask, params, constraints, start_idx, end_idx):
    ts = np.asarray(tag_scores, np.float32)
    am = np.asarray(attention_mask, np.int64)
    params = np.asarray(params, np.float32)
    constraints = np.asarray(constraints, np.float32)
    B, N, C = ts.shape
    max_length = int(am.sum(-1).max())
    ts = ts[:, :max_length]
    am = am[:, :max_length]

    log_phis = ts[:, :, None, :] + params.T[None, None, :, :]

    emissions = np.transpose(ts, (1, 0, 2))
    mask = np.transpose(am, (1, 0)).astype(bool)
    mask = np.concatenate([mask[1:], np.zeros((1, B), bool)], axis=0)
    Np = max_length

    trans = params + (1.0 - constraints) * (-INF)
    score = trans[start_idx][None, :] + emissions[1]
    history = []
    for i in range(2, Np):
        nxt = score[:, :, None] + trans[None] + emissions[i][:, None, :]
        nxt_max = nxt.max(axis=1)
        idx = nxt.argmax(axis=1)
        score = np.where(mask[i][:, None], nxt_max, score)
        history.append(idx)
    score = score + trans[:, end_idx][None, :]
    best_last = score.argmax(axis=1)

    tags = np.zeros((Np, B), dtype=np.int64)
    tags[Np - 1] = best_last
    cur = best_last
    for t in range(Np - 2, 0, -1):
        hist = history[t - 1]
        hist = np.where(mask[t + 1][:, None], hist, best_last[:, None])
        cur = hist[np.arange(B), cur]
        tags[t] = cur
    tags[0] = 0
    return tags.T, log_phis


# ----------------------------------------------------------------------------- #
if __name__ == "__main__":
    # deterministic synthetic setup (no checkpoints)
    SET_LABELS = {0: 'O', 1: 'START', 2: 'END', 3: 'B-PER', 4: 'I-PER',
                  5: 'B-LOC', 6: 'I-LOC', 7: 'B-MISC'}
    ENCODING = 'BIO'
    label2idx = {v: k for k, v in SET_LABELS.items()}
    C = len(SET_LABELS)
    B, N = 4, 8

    key = jax.random.PRNGKey(0)
    k_params, k_scores = jax.random.split(key)

    constraints = jnp.asarray(allowed_transitions(ENCODING, SET_LABELS), dtype=jnp.float32)
    transition_params = 0.001 * jax.random.normal(k_params, (C, C), dtype=jnp.float32)
    tag_scores = jax.random.normal(k_scores, (B, N, C), dtype=jnp.float32)   # (B, N, C)
    attention_mask = jnp.array([[1] * 8,
                                [1] * 5 + [0] * 3,
                                [1] * 8,
                                [1] * 3 + [0] * 5], dtype=jnp.int32)

    outputs, losses = patial_eer_crf_forward(
        tag_scores, attention_mask, transition_params, constraints,
        label2idx['START'], label2idx['END'])

    iob2 = jax.block_until_ready(outputs['iob2'])
    log_phis = jax.block_until_ready(outputs['log_phis'])

    ref_tags, ref_log_phis = reference_forward(
        tag_scores, attention_mask, transition_params, constraints,
        label2idx['START'], label2idx['END'])
    max_length = ref_tags.shape[1]

    assert iob2.shape == (B, N)
    assert log_phis.shape == (B, N, C, C)
    assert np.array_equal(np.asarray(iob2)[:, :max_length], ref_tags), "viterbi decode mismatch"
    assert np.allclose(np.asarray(log_phis)[:, :max_length], ref_log_phis, atol=1e-5), \
        "log_phis mismatch"

    # Also exercise a single-program, wider-lane Viterbi block explicitly (Bt = B).
    trans = transition_params + (1.0 - constraints) * (-INF)
    lengths = jnp.sum(attention_mask, axis=-1).astype(jnp.int32)
    iob2_bt = jax.block_until_ready(
        viterbi_decode_pallas(tag_scores, lengths, trans,
                              label2idx['START'], label2idx['END'], batch_tile=B))
    assert np.array_equal(np.asarray(iob2_bt)[:, :max_length], ref_tags), "viterbi (Bt=B) mismatch"

    print("KERNEL_OK")
</pallas_src>

<mosaic_0001>
module attributes {stable_mosaic.version = 11 : i64} {
  func.func @kernel(%arg0: i32, %arg1: i32, %arg2: memref<1x8x8xf32, #tpu.memory_space<vmem>>, %arg3: memref<1x64xf32, #tpu.memory_space<vmem>>, %arg4: memref<1x8x64xf32, #tpu.memory_space<vmem>>) attributes {dimension_semantics = [#tpu.dimension_semantics<parallel>, #tpu.dimension_semantics<parallel>], iteration_bounds = array<i64: 4, 1>, scalar_prefetch = 0 : i64, scratch_operands = 0 : i64, tpu.core_type = #tpu.core_type<tc>, window_params = [{transform_indices = @transform_0, window_bounds = array<i64: 1, 8, 8>}, {pipeline_mode = #tpu.pipeline_mode<synchronous>, transform_indices = @transform_1, window_bounds = array<i64: 1, 64>}, {transform_indices = @transform_2, window_bounds = array<i64: 1, 8, 64>}]} {
    %c0 = arith.constant 0 : index
    %c0_0 = arith.constant 0 : index
    %c0_1 = arith.constant 0 : index
    %0 = vector.load %arg2[%c0, %c0_0, %c0_1] : memref<1x8x8xf32, #tpu.memory_space<vmem>>, vector<1x8x8xf32>
    %1 = tpu.concatenate %0, %0, %0, %0, %0, %0, %0, %0 in 2 : vector<1x8x8xf32>, vector<1x8x8xf32>, vector<1x8x8xf32>, vector<1x8x8xf32>, vector<1x8x8xf32>, vector<1x8x8xf32>, vector<1x8x8xf32>, vector<1x8x8xf32> -> vector<1x8x64xf32>
    %c0_2 = arith.constant 0 : index
    %c0_3 = arith.constant 0 : index
    %2 = vector.load %arg3[%c0_2, %c0_3] : memref<1x64xf32, #tpu.memory_space<vmem>>, vector<1x64xf32>
    %3 = vector.shape_cast %2 : vector<1x64xf32> to vector<1x1x64xf32>
    %4 = vector.broadcast %3 : vector<1x1x64xf32> to vector<1x8x64xf32>
    %5 = arith.addf %1, %4 : vector<1x8x64xf32>
    %c0_4 = arith.constant 0 : index
    %c0_5 = arith.constant 0 : index
    %c0_6 = arith.constant 0 : index
    %6 = vector.load %arg4[%c0_4, %c0_5, %c0_6] : memref<1x8x64xf32, #tpu.memory_space<vmem>>, vector<1x8x64xf32>
    tpu.vector_store %arg4[%c0_4, %c0_5, %c0_6], %5 {strides = array<i32>} : memref<1x8x64xf32, #tpu.memory_space<vmem>>, vector<1x8x64xf32>,
    return
  }
  func.func @transform_0(%arg0: i32, %arg1: i32) -> (i32, i32, i32) {
    %c0_i32 = arith.constant 0 : i32
    %c0_i32_0 = arith.constant 0 : i32
    return %arg0, %arg1, %c0_i32 : i32, i32, i32
  }
  func.func @transform_1(%arg0: i32, %arg1: i32) -> (i32, i32) {
    %c0_i32 = arith.constant 0 : i32
    %c0_i32_0 = arith.constant 0 : i32
    %c0_i32_1 = arith.constant 0 : i32
    return %c0_i32, %c0_i32_0 : i32, i32
  }
  func.func @transform_2(%arg0: i32, %arg1: i32) -> (i32, i32, i32) {
    %c0_i32 = arith.constant 0 : i32
    %c0_i32_0 = arith.constant 0 : i32
    return %arg0, %arg1, %c0_i32 : i32, i32, i32
  }
}

</mosaic_0001>

<bundles_post_ra>
// kernel: tpu_custom_call.1
= control target key start
LH: loop header
LB: loop body
LE: loop exit
PB: predicated region body
PF: predicated region fallthrough
CT: control target
= control target key end

     0   :  { %7 = vsyncpa [#allocation3], 0  ;;  %s762_s0 = inlined_call_operand.hbm [shape: f32[4,8,8], index: 0, kind: input, shape index: {}]   ;;  %s763_s1 = inlined_call_operand.hbm [shape: f32[1,64], index: 1, kind: input, shape index: {}]   ;;  %s764_s2 = inlined_call_operand.hbm [shape: f32[4,8,64], index: 2, kind: output, shape index: {}]  }
   0x1   :  { %9 = vsyncpa [#allocation3 + $0x1], 0 }
   0x2   :  { %10 = vsyncpa [#allocation6], 0 }
   0x3   :  { %11 = vsyncpa [#allocation4], 0 }
   0x4   :  { %13 = vsyncpa [#allocation4 + $0x1], 0  ;;  %s611_s9 = smov 0   ;;  %s613_s10 = smov 0  }
   0x5   :  { %s615_s11 = smov 0   ;;  %s617_s12 = smov 0  }
   0x6   :  { %s619_s13 = smov 0   ;;  %s621_s14 = smov 0  }
   0x7 LB: > { %s344_s15 = sadd.s32 4294967295, %s586_s14   ;;  %s345_s16 = sadd.s32 4294967294, %s586_s14   ;;  %s586_s14 = sphi %s621_s14, %s19_s14   ;;  %s582_s13 = sphi %s619_s13, %s776_s13   ;;  %s578_s12 = sphi %s617_s12, %s775_s12   ;;  %s574_s11 = sphi %s615_s11, %s774_s11   ;;  %s570_s10 = sphi %s613_s10, %s773_s10   ;;  %s566_s9 = sphi %s611_s9, %s772_s9  }
   0x8   : > { %p53_p0 = scmp.ne.s32.totalorder %s570_s10, %s566_s9  ;;  %p645_p1 = scmp.eq.s32.totalorder %s344_s15, 0 }
   0x9   : > { %p649_p2 = scmp.eq.s32.totalorder %s344_s15, 3  ;;  %p106_p3 = scmp.eq.s32.totalorder %s345_s16, 3 }
   0xa   : > { %p655_p4 = por %p645_p1, %p53_p0  ;;  %p346_p5 = scmp.ge.s32.totalorder %s586_s14, 1 }
   0xb   : > { %p660_p6 = por %p106_p3, %p53_p0  ;;  %p113_p7 = scmp.lt.s32.totalorder %s586_s14, 5 }
   0xc   : > { %s125_s23 = sshll.u32 %s763_s1, 4  ;;  %s588_s25 = smov [#allocation5]   ;;  %s126_s23 = int_to_ptr.hbm [resolvable:$true] %s125_s23 }
   0xd   : > { %p668_p8 = pnand %p346_p5, %p113_p7  ;;  %s127_s26 = sshll.u32 %s588_s25, 4  ;;  %s128_s26 = int_to_ptr.vmem [resolvable:$true] %s127_s26 }
   0xe   : > { %s31_s27 = sadd.s32 1, %s582_s13  ;;  %s40_s28 = sadd.s32 1, %s574_s11 }
   0xf   : > { %p367_p9 = pneg %p668_p8  ;;  %p33_p11 = scmp.ge.s32.totalorder %s31_s27, 4 }
  0x10   : > { %p47_p12 = scmp.ne.s32.totalorder %s574_s11, %s570_s10  ;;  %p48_p13 = scmp.eq.s32.totalorder %s586_s14, 0 }
  0x11   : > { %p368_p10 = pnand %p367_p9, %p645_p1  ;;  %s778_s27 = smov (%p33_p11, %s31_s27), 0 }
  0x12   : > { %p683_p0 = por %p48_p13, %p47_p12  ;;  %p689_p3 = por %p649_p2, %p47_p12 }
  0x13   : > { %370 = dma.hbm_to_vmem [thread:$0]  (!%p368_p10), %s126_s23, 16, %s128_s26, [#allocation6]  }
  0x14   : > { %s35_s3 = ssub.s32 %s582_s13, %s778_s27  ;;  %p380_p5 = scmp.lt.s32.totalorder %s586_s14, 4 }
  0x15   : > { %p38_p7 = scmp.eq.s32.totalorder %s35_s3, 0  ;;  %s138_s4 = sand.u32 1, %s574_s11  }
  0x16   : > { %s349_s5 = sshll.u32 %s138_s4, 3  ;;  %s350_s7 = sshll.u32 %s582_s13, 3 }
  0x17   : > { %s698_s6 = scalar_select %p38_p7, %s574_s11, %s40_s28  }
  0x18   : > { %s147_s16 = scalar_lea.hbm %s762_s0, %s350_s7  ;;  %s142_s21 = scalar_lea.vmem [#allocation2], %s349_s5 }
  0x19   : > { %s151_s22 = sshll.u32 %s142_s21, 4  ;;  %s149_s18 = sshll.u32 %s147_s16, 4  ;;  %s152_s22 = int_to_ptr.vmem [resolvable:$true] %s151_s22  ;;  %s150_s18 = int_to_ptr.hbm [resolvable:$true] %s149_s18 }
  0x1a   : > { %p372_p2 = pnand %p380_p5, %p683_p0  ;;  %s139_s23 = scalar_lea.sflag [#allocation3], %s138_s4 }
  0x1b   : > { %160 = sbr.rel (%p668_p8) target bundleno = 173 (0xad), region = 28  ;;  %s709_s25 = sand.u32 (!%p668_p8), 1, %s570_s10  }
  0x1c   : > { %374 = dma.hbm_to_vmem [thread:$0]  (!%p372_p2), %s150_s18, 128, %s152_s22, %s139_s23  }
  0x1d   : > { %s352_s26 = sshll.u32 (!%p668_p8), %s709_s25, 3  ;;  %s163_s28 = scalar_lea.sflag (!%p668_p8), [#allocation3], %s709_s25 }
  0x1e   : > { %s166_s3 = scalar_lea.vmem (!%p668_p8), [#allocation2], %s352_s26 }
  0x20   : > { %553 = dma.done.wait (%p655_p4), %s163_s28, 128  }
  0x21   : > { %555 = vsyncadd (%p655_p4), %s163_s28, 4294967168 }
  0x22   : > { %557 = dma.done.wait (%p645_p1), [#allocation6], 16  }
  0x23   : > { %559 = vsyncadd (%p645_p1), [#allocation6], 4294967280  ;;  %v193_v0 = vld [vmem:[%s166_s3] sm:$0xff]  ;;  %s589_s24 = smov 8   ;;  %s590_s29 = smov 24   ;;  %vm216_vm0 = vcmask 64512  }
  0x24   : > { %195 = vrot.lane.b32.xlu0 %v193_v0, %s589_s24  ;;  %201 = vrot.lane.b32.xlu1 %v193_v0, %s590_s29  ;;  %s591_s4 = smov 40   ;;  %s592_s5 = smov 16   ;;  %vm218_vm1 = vcmask 130048   ;;  %vm220_vm2 = vcmask 195584   ;;  %vm222_vm3 = vcmask 261120   ;;  %vm224_vm4 = vcmask 326656  }
  0x25   : > { %207 = vrot.lane.b32.xlu2 %v193_v0, %s591_s4  ;;  %s593_s7 = smov 32   ;;  %s594_s19 = smov 48   ;;  %vm226_vm5 = vcmask 392192   ;;  %vm228_vm6 = vcmask 457728   ;;  %v439_v12 = vld [vmem:[#allocation5] ss:$0 sm:$0xff] }
  0x26   : > { %s595_s8 = smov 56   ;;  %s356_s17 = sshll.u32 %s578_s12, 3  ;;  %vm235_vm7 = vcmask 523264  }
  0x27   : > { %s249_s21 = scalar_lea.hbm %s764_s2, %s356_s17  ;;  %s192_s22 = scalar_lea.vmem [#allocation7], %s352_s26 }
  0x28   : > { %s251_s18 = sshll.u32 %s192_s22, 4  ;;  %s253_s23 = sshll.u32 %s249_s21, 4  ;;  %s252_s18 = int_to_ptr.vmem [resolvable:$true] %s251_s18  ;;  %s254_s23 = int_to_ptr.hbm [resolvable:$true] %s253_s23 }
  0x29   : > { %s238_s12 = scalar_lea.sflag [#allocation4], %s709_s25  ;;  %s514_s28 = sshra.s32 %s254_s23, 4  ;;  %s515_s28 = int_to_ptr.hbm [resolvable:$true] %s514_s28 }
  0x2a   : > { %s516_s3 = scalar_lea.hbm %s515_s28, 8  ;;  %s520_s29 = scalar_lea.hbm %s764_s2, 32 }
  0x2b   : > { %p517_p1 = scmp.ne.s32.totalorder %s515_s28, %s516_s3  ;;  %p521_p9 = scmp.lt.s32.totalorder %s515_s28, %s764_s2 }
  0x2c   : > { %198 = vrot.lane.b32.xlu0 %v193_v0, %s592_s5  ;;  %204 = vrot.lane.b32.xlu1 %v193_v0, %s593_s7  ;;  %p522_p10 = scmp.lt.s32.totalorder %s520_s29, %s516_s3 }
  0x2d   : > { %210 = vrot.lane.b32.xlu2 %v193_v0, %s594_s19  ;;  %p518_p4 = pnand %p517_p1, %p689_p3 }
  0x2e   : > { %p523_p11 = por %p522_p10, %p521_p9 }
  0x2f   : > { %p519_p8 = pneg %p518_p4 }
  0x31   : > { %p524_p12 = pnand %p523_p11, %p519_p8 }
  0x34   : > { %213 = vrot.lane.b32.xlu0 %v193_v0, %s595_s8 }
  0x7f   : > { %v208_v3 = vpop.permute.xlu2 %207 }
  0x87   : > { %v211_v10 = vpop.permute.xlu2 %210 }
  0x96   : > { %v196_v1 = vpop.permute.xlu0 %195  ;;  %v202_v2 = vpop.permute.xlu1 %201 }
  0x97   : > { %v217_v4 = vsel %vm216_vm0, %v193_v0, %v196_v1 }
  0x9e   : > { %v199_v5 = vpop.permute.xlu0 %198  ;;  %v205_v6 = vpop.permute.xlu1 %204 }
  0x9f   : > { %v219_v7 = vsel %vm218_vm1, %v217_v4, %v199_v5 }
  0xa0   : > { %v221_v8 = vsel %vm220_vm2, %v219_v7, %v202_v2 }
  0xa1   : > { %v223_v9 = vsel %vm222_vm3, %v221_v8, %v205_v6 }
  0xa2   : > { %v225_v11 = vsel %vm224_vm4, %v223_v9, %v208_v3 }
  0xa3   : > { %v227_v13 = vsel %vm226_vm5, %v225_v11, %v211_v10 }
  0xa6   : > { %v214_v14 = vpop.permute.xlu0 %213 }
  0xa7   : > { %v229_v15 = vsel %vm228_vm6, %v227_v13, %v214_v14 }
  0xa8   : > { %v234_v16 = vadd.f32 %v439_v12, %v229_v15 }
  0xaa   : > { %236 = vst.msk [vmem:[%s192_s22] sm:$0xff] %vm235_vm7, %v234_v16 }
  0xab   : > { %527 = shalt.err (!%p524_p12)
}
  0xac   : > { %365 = dma.vmem_to_hbm [thread:$0]  (%p689_p3), %s252_s18, 128, %s254_s23, %s238_s12  }
  0xad PF: > { %p382_p13 = scmp.ge.s32.totalorder %s586_s14, 2  ;;  %s265_s25 = sand.u32 1, %s566_s9  }
  0xae   : > { %s266_s7 = scalar_lea.sflag [#allocation4], %s265_s25 }
  0xaf   : > { %p376_p0 = pnand %p382_p13, %p660_p6 }
  0xb1   : > { %p377_p5 = pneg %p376_p0 }
  0xb3   : > { %561 = dma.done.wait (%p377_p5), %s266_s7, 128  }
  0xb4   : > { %563 = vsyncadd (%p377_p5), %s266_s7, 4294967168  ;;  %s19_s14 = sadd.s32 1, %s586_s14   ;;  %s772_s9 = smov %s570_s10 }
  0xb5   : > { %p16_p7 = scmp.ge.s32.totalorder %s19_s14, 6   ;;  %s773_s10 = smov %s574_s11 }
  0xb6   : > { %s774_s11 = smov %s698_s6  ;;  %s775_s12 = smov %s582_s13 }
  0xb7   : > { %s776_s13 = smov %s778_s27  ;;  %18 = sbr.rel (!%p16_p7) target bundleno = 7 (0x7), region = 77 }
  0xbc   :  { %272 = vsyncpa [#allocation3], 1 }
  0xbd   :  { %274 = vsyncpa [#allocation3 + $0x1], 1 }
  0xbe   :  { %275 = vsyncpa [#allocation6], 1 }
  0xbf   :  { %276 = vsyncpa [#allocation4], 1 }
  0xc0   :  { %278 = vsyncpa [#allocation4 + $0x1], 1 }

</bundles_post_ra>
